<compile_context>
chip_gen: v5e
topology: v5e:2x2
jax: 0.10.0
libtpu: 0.0.40
codegen_flags: <defaults>
</compile_context>

<pallas_src>
import jax
import jax.numpy as jnp
from jax import lax
from jax.experimental import pallas as pl
from jax.experimental.pallas import tpu as pltpu


def _round_up(x: int, m: int) -> int:
    return ((x + m - 1) // m) * m


def _choose_row_tile(n_pad8: int, k: int, fp: int, itemsize: int) -> int:
    """Largest multiple-of-8 output row tile keeping VMEM use ~12 MiB.

    Budget covers the resident X block (conservatively counted double-
    buffered) plus the double-buffered output tile, leaving headroom under
    the default scoped VMEM limit on every generation (incl. v7x's 64 MiB
    physical VMEM).
    """
    budget = 12 * 1024 * 1024
    x_bytes = 2 * k * fp * itemsize          # X block (double-buffer bound)
    per_row = 2 * fp * itemsize              # one output row, double-buffered
    avail = max(budget - x_bytes, 8 * per_row)
    tn = (avail // per_row // 8) * 8
    return int(max(8, min(n_pad8, tn, 1024)))


def _unpool_kernel(sidx_ref, order_ref, starts_ref, x_ref, o_ref):
    # sidx_ref  : (K,)   int32 SMEM -- idx sorted ascending (stable sort)
    # order_ref : (K,)   int32 SMEM -- argsort(idx): source X row for sidx[j]
    # starts_ref: (T+1,) int32 SMEM -- per-output-tile offsets into sidx
    # x_ref     : (K, Fp)  VMEM     -- all pooled features (resident block)
    # o_ref     : (TN, Fp) VMEM     -- output rows [i*TN, (i+1)*TN)
    i = pl.program_id(0)
    tn = o_ref.shape[0]
    row0 = i * tn

    # Fused zero-fill: this kernel writes every output byte exactly once
    # (no separate jnp.zeros kernel, no aliased zero buffer).
    o_ref[...] = jnp.zeros_like(o_ref)

    lo = starts_ref[i]
    hi = starts_ref[i + 1]

    def body(j, carry):
        local = sidx_ref[j] - row0           # destination row inside the tile
        src = order_ref[j]                   # source row in X
        o_ref[pl.ds(local, 1), :] = x_ref[pl.ds(src, 1), :]
        return carry

    # Sequential within the tile -> deterministic last-write-wins for
    # duplicate idx entries (matches torch's `new_X[idx] = X`).
    lax.fori_loop(lo, hi, body, 0)


@jax.jit
def graph_unpool(A, X, idx):
    """Pallas equivalent of GraphUnpool.forward(A, X, idx) -> (A, new_X)."""
    N = A.shape[0]
    K, F = X.shape
    itemsize = jnp.dtype(X.dtype).itemsize

    # Lane-dense feature dim (multiple of 128) so row stores are unmasked.
    Fp = _round_up(F, 128)
    x_p = X if Fp == F else jnp.pad(X, ((0, 0), (0, Fp - F)))

    # PyTorch raises on out-of-range indices; clamp so the scatter can never
    # write out of bounds for malformed input.
    # TODO(synk): no in-kernel equivalent of torch's index-bounds error.
    idx_i32 = jnp.clip(idx.astype(jnp.int32), 0, N - 1)

    tn = _choose_row_tile(_round_up(N, 8), K, Fp, itemsize)
    Np = _round_up(N, tn)
    num_tiles = Np // tn

    # Stable sort of idx so each output tile only walks its own rows; the
    # per-tile offsets are scalar-prefetched into SMEM and also drive nothing
    # else (all blocks are statically indexed).
    order = jnp.argsort(idx_i32, stable=True).astype(jnp.int32)
    sidx = idx_i32[order]
    starts = jnp.searchsorted(
        sidx, jnp.arange(num_tiles + 1, dtype=jnp.int32) * tn
    ).astype(jnp.int32)

    cost = pl.CostEstimate(
        flops=0,
        transcendentals=0,
        bytes_accessed=(K * Fp + Np * Fp) * itemsize + 3 * K * 4,
    )

    out = pl.pallas_call(
        _unpool_kernel,
        out_shape=jax.ShapeDtypeStruct((Np, Fp), X.dtype),
        grid_spec=pltpu.PrefetchScalarGridSpec(
            num_scalar_prefetch=3,
            grid=(num_tiles,),
            in_specs=[
                # All of X resident in VMEM; constant block index means the
                # pipeline does not re-fetch it across output tiles.
                pl.BlockSpec((K, Fp), lambda i, s, o, st: (0, 0)),
            ],
            out_specs=pl.BlockSpec((tn, Fp), lambda i, s, o, st: (i, 0)),
        ),
        compiler_params=pltpu.CompilerParams(
            # Disjoint output tiles, each produced in a single step => the
            # grid axis is truly parallel (both TCs on v7x), while duplicate
            # idx handling stays deterministic inside each tile.
            dimension_semantics=("parallel",),
            vmem_limit_bytes=32 * 1024 * 1024,
        ),
        cost_estimate=cost,
    )(sidx, order, starts, x_p)

    new_X = out[:N, :F]
    return A, new_X


if __name__ == "__main__":
    key = jax.random.PRNGKey(0)
    k_a, k_x, k_idx = jax.random.split(key, 3)

    # Case 1: lane-dense shapes, unique idx (as produced by a graph pool).
    N, K, F = 16, 8, 128
    A = jax.random.normal(k_a, (N, N), dtype=jnp.float32)
    X = jax.random.normal(k_x, (K, F), dtype=jnp.float32)
    idx = jax.random.permutation(k_idx, N)[:K].astype(jnp.int32)

    A_out, new_X = graph_unpool(A, X, idx)
    jax.block_until_ready(new_X)

    ref = jnp.zeros((N, F), dtype=X.dtype).at[idx].set(X)
    assert A_out.shape == A.shape and new_X.shape == (N, F)
    assert jnp.array_equal(A_out, A)
    assert jnp.array_equal(new_X, ref), "mismatch vs reference scatter (case 1)"

    # Case 2: non-multiple-of-128 feature dim (padding path) and a duplicate
    # index; reference built sequentially so last-write-wins like torch.
    N2, K2, F2 = 20, 6, 96
    A2 = jax.random.normal(k_a, (N2, N2), dtype=jnp.float32)
    X2 = jax.random.normal(k_x, (K2, F2), dtype=jnp.float32)
    idx2 = jnp.array([3, 17, 5, 3, 11, 0], dtype=jnp.int32)

    _, new_X2 = graph_unpool(A2, X2, idx2)
    jax.block_until_ready(new_X2)

    ref2 = jnp.zeros((N2, F2), dtype=X2.dtype)
    for k in range(K2):  # sequential assignment => last write wins
        ref2 = ref2.at[int(idx2[k])].set(X2[k])
    assert new_X2.shape == (N2, F2)
    assert jnp.array_equal(new_X2, ref2), "mismatch vs reference scatter (case 2)"

    print("KERNEL_OK")
</pallas_src>

<mosaic_0001>
module attributes {stable_mosaic.version = 11 : i64} {
  func.func @_unpool_kernel(%arg0: i32, %arg1: memref<8xi32, #tpu.memory_space<smem>>, %arg2: memref<8xi32, #tpu.memory_space<smem>>, %arg3: memref<2xi32, #tpu.memory_space<smem>>, %arg4: memref<8x128xf32, #tpu.memory_space<vmem>>, %arg5: memref<16x128xf32, #tpu.memory_space<vmem>>) attributes {dimension_semantics = [#tpu.dimension_semantics<parallel>], iteration_bounds = array<i64: 1>, scalar_prefetch = 3 : i64, scratch_operands = 0 : i64, tpu.core_type = #tpu.core_type<tc>, window_params = [{pipeline_mode = #tpu.pipeline_mode<synchronous>, transform_indices = @transform_0, window_bounds = array<i64: 8, 128>}, {transform_indices = @transform_1, window_bounds = array<i64: 16, 128>}]} {
    %c16_i32 = arith.constant 16 : i32
    %0 = arith.muli %arg0, %c16_i32 : i32
    %cst = arith.constant 0.000000e+00 : f32
    %1 = vector.broadcast %cst : f32 to vector<16x128xf32>
    %c0 = arith.constant 0 : index
    %c0_0 = arith.constant 0 : index
    %2 = vector.load %arg5[%c0, %c0_0] : memref<16x128xf32, #tpu.memory_space<vmem>>, vector<16x128xf32>
    tpu.vector_store %arg5[%c0, %c0_0], %1 {strides = array<i32>} : memref<16x128xf32, #tpu.memory_space<vmem>>, vector<16x128xf32>,
    %3 = arith.index_cast %arg0 : i32 to index
    %4 = memref.load %arg3[%3] : memref<2xi32, #tpu.memory_space<smem>>
    %c1_i32 = arith.constant 1 : i32
    %5 = arith.addi %arg0, %c1_i32 : i32
    %6 = arith.index_cast %5 : i32 to index
    %7 = memref.load %arg3[%6] : memref<2xi32, #tpu.memory_space<smem>>
    %c0_i32 = arith.constant 0 : i32
    %8 = arith.subi %7, %4 : i32
    %9 = arith.addi %4, %8 : i32
    %c1_i32_1 = arith.constant 1 : i32
    scf.for %arg6 = %4 to %9 step %c1_i32_1  : i32 {
      %10 = arith.index_cast %arg6 : i32 to index
      %11 = memref.load %arg1[%10] : memref<8xi32, #tpu.memory_space<smem>>
      %12 = arith.subi %11, %0 : i32
      %13 = arith.index_cast %arg6 : i32 to index
      %14 = memref.load %arg2[%13] : memref<8xi32, #tpu.memory_space<smem>>
      %15 = arith.index_cast %14 : i32 to index
      %c0_2 = arith.constant 0 : index
      %16 = vector.load %arg4[%15, %c0_2] : memref<8x128xf32, #tpu.memory_space<vmem>>, vector<1x128xf32>
      %17 = arith.index_cast %12 : i32 to index
      %c0_3 = arith.constant 0 : index
      %18 = vector.load %arg5[%17, %c0_3] : memref<16x128xf32, #tpu.memory_space<vmem>>, vector<1x128xf32>
      tpu.vector_store %arg5[%17, %c0_3], %16 {strides = array<i32>} : memref<16x128xf32, #tpu.memory_space<vmem>>, vector<1x128xf32>,
    }
    return
  }
  func.func @transform_0(%arg0: i32, %arg1: memref<8xi32, #tpu.memory_space<smem>>, %arg2: memref<8xi32, #tpu.memory_space<smem>>, %arg3: memref<2xi32, #tpu.memory_space<smem>>) -> (i32, i32) {
    %c0_i32 = arith.constant 0 : i32
    %c0_i32_0 = arith.constant 0 : i32
    %c0_i32_1 = arith.constant 0 : i32
    return %c0_i32, %c0_i32_0 : i32, i32
  }
  func.func @transform_1(%arg0: i32, %arg1: memref<8xi32, #tpu.memory_space<smem>>, %arg2: memref<8xi32, #tpu.memory_space<smem>>, %arg3: memref<2xi32, #tpu.memory_space<smem>>) -> (i32, i32) {
    %c0_i32 = arith.constant 0 : i32
    %c0_i32_0 = arith.constant 0 : i32
    return %arg0, %c0_i32 : i32, i32
  }
}

</mosaic_0001>

<bundles_post_ra>
// kernel: custom-call.1
= control target key start
LH: loop header
LB: loop body
LE: loop exit
PB: predicated region body
PF: predicated region fallthrough
CT: control target
= control target key end

     0   :  { %s6_s0 = inlined_call_operand.vmem [shape: u32[2], index: 0, kind: output, shape index: {}]  }

// kernel: graph_unpool.1
= control target key start
LH: loop header
LB: loop body
LE: loop exit
PB: predicated region body
PF: predicated region fallthrough
CT: control target
= control target key end

     0   :  { %s162_s21 = smov [#allocation3]   ;;  %s163_s22 = smov [#allocation4]   ;;  %s209_s0 = inlined_call_operand.vmem [shape: s32[8], index: 0, kind: input, shape index: {}]   ;;  %s210_s3 = inlined_call_operand.vmem [shape: f32[8,128], index: 3, kind: input, shape index: {}]   ;;  %s211_s4 = inlined_call_operand.hbm [shape: f32[16,128], index: 4, kind: output, shape index: {}]   ;;  %s212_s1 = inlined_call_operand.vmem [shape: s32[8], index: 1, kind: input, shape index: {}]   ;;  %s213_s2 = inlined_call_operand.vmem [shape: s32[2], index: 2, kind: input, shape index: {}]  }
   0x1   :  { %s10_s17 = sshll.u32 %s209_s0, 4  ;;  %s15_s20 = sshll.u32 %s212_s1, 4  ;;  %s11_s17 = int_to_ptr.vmem [resolvable:$true] %s10_s17  ;;  %s16_s20 = int_to_ptr.vmem [resolvable:$true] %s15_s20 }
   0x2   :  { %13 = dma.vmem_to_smem %s11_s17, 16, %s162_s21, [#allocation2] }
   0x3   :  { %18 = dma.vmem_to_smem %s16_s20, 16, %s163_s22, [#allocation2] }
   0x4   :  { %s20_s25 = sshll.u32 %s213_s2, 4  ;;  %s164_s26 = smov [#allocation5]   ;;  %s21_s25 = int_to_ptr.vmem [resolvable:$true] %s20_s25 }
   0x5   :  { %23 = dma.vmem_to_smem %s21_s25, 16, %s164_s26, [#allocation2] }
   0x6   :  { %154 = dma.done.wait [#allocation2], 48 }
   0x7   :  { %155 = vsyncadd [#allocation2], 4294967248 }
   0x8   :  { %26 = sfence }
   0x9   :  { %27 = vsyncpa [#allocation7], 0  ;;  %s33_s0 = sld [smem:[#allocation5]]   ;;  %v165_v0 = vmov 0.0  }
   0xa   :  { %31 = vst [vmem:[#allocation6] sm:$0xff] %v165_v0  ;;  %s74_s1 = sld [smem:[#allocation5 + $0x1]] }
   0xb   :  { %32 = vst [vmem:[#allocation6 + $0x8] sm:$0xff] %v165_v0 }
  0x10   :  { %p70_p0 = scmp.ge.s32.totalorder %s33_s0, %s74_s1 }
  0x11   :  { %s158_s27 = smov (!%p70_p0), %s33_s0  }
  0x12   :  { %71 = sbr.rel (%p70_p0) target bundleno = 33 (0x21), region = 27 }
  0x17 LB: > { %s42_s28 = sld [smem:[#allocation3 + %s160_s27]]  ;;  %s160_s27 = sphi %s158_s27, %s39_s27  }
  0x18   : > { %s44_s2 = sld [smem:[#allocation4 + %s160_s27]]  ;;  %s39_s27 = sadd.s32 1, %s160_s27  }
  0x19   : > { %p38_p1 = scmp.ge.s32.totalorder %s39_s27, %s74_s1 }
  0x1c   :  { %41 = sbr.rel (!%p38_p1) target bundleno = 23 (0x17), region = 33 }
  0x1d   : > { %s47_s6 = scalar_lea.vmem [#allocation6], %s42_s28 }
  0x1e   : > { %s45_s5 = scalar_lea.vmem %s210_s3, %s44_s2 }
  0x1f   : > { %v46_v1 = vld [vmem:[%s45_s5] sm:$0x1] }
  0x20   : > { %48 = vst [vmem:[%s47_s6] sm:$0x1] %v46_v1 }
  0x21 PF:  { %s55_s9 = sshll.u32 %s211_s4, 4  ;;  %s166_s10 = smov [#allocation6]   ;;  %s56_s9 = int_to_ptr.hbm [resolvable:$true] %s55_s9 }
  0x22   :  { %s53_s11 = sshll.u32 %s166_s10, 4  ;;  %s167_s12 = smov 128   ;;  %s54_s11 = int_to_ptr.vmem [resolvable:$true] %s53_s11 }
  0x23   :  { %s168_s13 = smov 8  }
  0x24   :  { %61 = dma.vmem_to_hbm [thread:$0]  %s54_s11, 256, %s56_s9, [#allocation7], %s167_s12, %s167_s12, %s168_s13  }
  0x25   :  { %156 = dma.done.wait [#allocation7], 256  }
  0x26   :  { %157 = vsyncadd [#allocation7], 4294967040 }
  0x27   :  { %66 = vsyncpa [#allocation7], 1 }

</bundles_post_ra>
